<compile_context>
chip_gen: v5e
topology: v5e:2x2
jax: 0.10.0
libtpu: 0.0.40
codegen_flags: <defaults>
</compile_context>

<pallas_src>
import functools

import jax
import jax.numpy as jnp
from jax import lax
from jax.experimental import pallas as pl
from jax.experimental.pallas import tpu as pltpu

LANE = 128
SUBLANE = 8
CHUNK_ROWS = 512                 # rows per inner accumulation step (64 f32 vregs)
BLOCK_BYTES = 3 * 1024 * 1024    # per-input block; 2 inputs x 2 bufs = 12 MiB


def _min_sublane(itemsize: int) -> int:
    # Minimum second-minor tile: 8 (f32), 16 (bf16/f16), 32 (int8/fp8).
    return max(SUBLANE, 32 // max(1, itemsize))


def _num_tensorcores() -> int:
    # v7x: 2 TensorCores/chip; v5e/v6e: 1.  Best-effort query; fall back to 1
    # (always safe / no duplicate work) if the attribute isn't available.
    try:
        info = pltpu.get_tpu_info()
        for attr in ("num_tensorcores", "tensorcore_count", "num_cores"):
            v = getattr(info, attr, None)
            if isinstance(v, int) and v > 0:
                return min(2, v)
    except Exception:
        pass
    return 1


def _simse_kernel(pred_ref, real_ref, out_ref, acc_ref, *, tm: int, chunk: int):
    j = pl.program_id(1)   # streaming axis ("arbitrary")

    @pl.when(j == 0)
    def _():
        acc_ref[...] = jnp.zeros_like(acc_ref)

    nchunks = tm // chunk

    def body(k, carry):
        r0 = pl.multiple_of(k * chunk, chunk)
        # Load native dtype, upcast on vregs (halves HBM traffic for bf16).
        d = (real_ref[pl.ds(r0, chunk), :].astype(jnp.float32)
             - pred_ref[pl.ds(r0, chunk), :].astype(jnp.float32))
        # Fold (chunk,128) into the (8,128) accumulator: pure vreg VALU adds,
        # no cross-lane work on the hot path.
        acc_ref[...] += d.reshape(chunk // SUBLANE, SUBLANE, LANE).sum(axis=0)
        return carry

    lax.fori_loop(0, nchunks, body, 0, unroll=(nchunks <= 4))

    @pl.when(j == pl.num_programs(1) - 1)
    def _():
        # Single cross-lane/sublane reduce per slice; square/scale in wrapper.
        out_ref[0, 0] = jnp.sum(acc_ref[...])


def simse(pred: jax.Array, real: jax.Array, *,
          block_rows: int | None = None, num_slices: int | None = None) -> jax.Array:
    assert pred.shape == real.shape, "pred/real must have identical shapes"
    n = pred.size  # torch.numel
    if n == 0:
        return jnp.float32(0.0)

    p = jnp.ravel(pred)
    r = jnp.ravel(real)

    itemsize = jnp.dtype(pred.dtype).itemsize
    min_sub = _min_sublane(itemsize)
    rows = n // LANE

    total = jnp.float32(0.0)
    main = 0

    if rows >= min_sub:
        # ~3 MiB per input block; bf16 gets proportionally more rows.
        tm_cap = max(min_sub, BLOCK_BYTES // (LANE * itemsize))
        tm = min(block_rows if block_rows else tm_cap, rows, tm_cap)
        if tm >= CHUNK_ROWS:
            tm = (tm // CHUNK_ROWS) * CHUNK_ROWS
            chunk = CHUNK_ROWS
        else:
            tm = max(min_sub, (tm // min_sub) * min_sub)
            chunk = tm

        nb = rows // tm            # full blocks only -> kernel never masks
        main = nb * tm * LANE

        # Slice (per-TensorCore) count: only split if it divides nb exactly,
        # so every block is a real, non-duplicated DMA.
        want = num_slices if num_slices is not None else _num_tensorcores()
        ns = 1
        for d in range(min(max(1, want), nb), 0, -1):
            if nb % d == 0:
                ns = d
                break
        bps = nb // ns

        p2 = p[:main].reshape(nb * tm, LANE)
        r2 = r[:main].reshape(nb * tm, LANE)

        kernel = functools.partial(_simse_kernel, tm=tm, chunk=chunk)
        in_map = lambda c, j, bps=bps: (c * bps + j, 0)

        partials = pl.pallas_call(
            kernel,
            out_shape=jax.ShapeDtypeStruct((ns, 1), jnp.float32),
            grid_spec=pltpu.PrefetchScalarGridSpec(
                num_scalar_prefetch=0,
                grid=(ns, bps),
                in_specs=[
                    pl.BlockSpec((tm, LANE), in_map),
                    pl.BlockSpec((tm, LANE), in_map),
                ],
                out_specs=pl.BlockSpec(
                    (1, 1), lambda c, j: (c, 0), memory_space=pltpu.SMEM),
                scratch_shapes=[pltpu.VMEM((SUBLANE, LANE), jnp.float32)],
            ),
            compiler_params=pltpu.CompilerParams(
                dimension_semantics=("parallel", "arbitrary"),
            ),
            cost_estimate=pl.CostEstimate(
                flops=2 * main,
                transcendentals=0,
                bytes_accessed=2 * main * itemsize + 4 * ns,
            ),
        )(p2, r2)
        total = total + jnp.sum(partials)

    # Ragged rows + sub-128 remainder (and tiny inputs): plain jnp, negligible.
    if main < n:
        total = total + jnp.sum(r[main:].astype(jnp.float32)
                                - p[main:].astype(jnp.float32))

    return (total * total) / jnp.float32(float(n) ** 2)


def simse_ref(pred, real):
    diffs = real.astype(jnp.float32) - pred.astype(jnp.float32)
    n = diffs.size
    return jnp.sum(diffs) ** 2 / (n ** 2)


if __name__ == "__main__":
    key = jax.random.PRNGKey(0)
    k1, k2 = jax.random.split(key)
    shape = (2, 4, 16, 16)  # NCHW, small synthetic input (n = 2048)
    pred = jax.random.normal(k1, shape, dtype=jnp.float32)
    real = jax.random.normal(k2, shape, dtype=jnp.float32)

    out = simse(pred, real)
    out = jax.block_until_ready(out)

    ref = simse_ref(pred, real)
    assert jnp.allclose(out, ref, rtol=1e-5, atol=1e-6), (out, ref)
    print("KERNEL_OK")
</pallas_src>

<mosaic_0001>
module attributes {stable_mosaic.version = 11 : i64} {
  func.func @_simse_kernel(%arg0: i32, %arg1: i32, %arg2: memref<16x128xf32, #tpu.memory_space<vmem>>, %arg3: memref<16x128xf32, #tpu.memory_space<vmem>>, %arg4: memref<1x1xf32, #tpu.memory_space<smem>>, %arg5: memref<8x128xf32, #tpu.memory_space<vmem>>) attributes {dimension_semantics = [#tpu.dimension_semantics<parallel>, #tpu.dimension_semantics<arbitrary>], iteration_bounds = array<i64: 1, 1>, scalar_prefetch = 0 : i64, scratch_operands = 1 : i64, tpu.core_type = #tpu.core_type<tc>, window_params = [{transform_indices = @transform_0, window_bounds = array<i64: 16, 128>}, {transform_indices = @transform_1, window_bounds = array<i64: 16, 128>}, {transform_indices = @transform_2, window_bounds = array<i64: 1, 1>}]} {
    %c0_i32 = arith.constant 0 : i32
    %0 = arith.cmpi eq, %arg1, %c0_i32 : i32
    %1 = arith.extui %0 : i1 to i32
    %c0_i32_0 = arith.constant 0 : i32
    %2 = arith.cmpi ne, %1, %c0_i32_0 : i32
    scf.if %2 {
      %cst_9 = arith.constant 0.000000e+00 : f32
      %18 = vector.broadcast %cst_9 : f32 to vector<8x128xf32>
      %c0_10 = arith.constant 0 : index
      %c0_11 = arith.constant 0 : index
      %19 = vector.load %arg5[%c0_10, %c0_11] : memref<8x128xf32, #tpu.memory_space<vmem>>, vector<8x128xf32>
      tpu.vector_store %arg5[%c0_10, %c0_11], %18 {strides = array<i32>} : memref<8x128xf32, #tpu.memory_space<vmem>>, vector<8x128xf32>,
    } else {
    }
    %c0_i32_1 = arith.constant 0 : i32
    %c16_i32 = arith.constant 16 : i32
    %3 = arith.muli %c0_i32_1, %c16_i32 : i32
    %4 = tpu.assume_multiple %3, 16 : i32
    %5 = arith.index_cast %4 : i32 to index
    %c0 = arith.constant 0 : index
    %6 = vector.load %arg3[%5, %c0] : memref<16x128xf32, #tpu.memory_space<vmem>>, vector<16x128xf32>
    %7 = arith.index_cast %4 : i32 to index
    %c0_2 = arith.constant 0 : index
    %8 = vector.load %arg2[%7, %c0_2] : memref<16x128xf32, #tpu.memory_space<vmem>>, vector<16x128xf32>
    %9 = arith.subf %6, %8 : vector<16x128xf32>
    %c0_3 = arith.constant 0 : index
    %c0_4 = arith.constant 0 : index
    %10 = vector.load %arg5[%c0_3, %c0_4] : memref<8x128xf32, #tpu.memory_space<vmem>>, vector<8x128xf32>
    %11 = vector.shape_cast %9 : vector<16x128xf32> to vector<2x8x128xf32>
    %cst = arith.constant dense<0.000000e+00> : vector<8x128xf32>
    %12 = vector.multi_reduction <add>, %11, %cst [0] : vector<2x8x128xf32> to vector<8x128xf32>
    %13 = arith.addf %10, %12 : vector<8x128xf32>
    %c0_5 = arith.constant 0 : index
    %c0_6 = arith.constant 0 : index
    %14 = vector.load %arg5[%c0_5, %c0_6] : memref<8x128xf32, #tpu.memory_space<vmem>>, vector<8x128xf32>
    tpu.vector_store %arg5[%c0_5, %c0_6], %13 {strides = array<i32>} : memref<8x128xf32, #tpu.memory_space<vmem>>, vector<8x128xf32>,
    %c1_i32 = arith.constant 1 : i32
    %c0_i32_7 = arith.constant 0 : i32
    %15 = arith.cmpi eq, %arg1, %c0_i32_7 : i32
    %16 = arith.extui %15 : i1 to i32
    %c0_i32_8 = arith.constant 0 : i32
    %17 = arith.cmpi ne, %16, %c0_i32_8 : i32
    scf.if %17 {
      %c0_9 = arith.constant 0 : index
      %c0_10 = arith.constant 0 : index
      %18 = vector.load %arg5[%c0_9, %c0_10] : memref<8x128xf32, #tpu.memory_space<vmem>>, vector<8x128xf32>
      %19 = vector.shape_cast %18 : vector<8x128xf32> to vector<1x8x128xf32>
      %cst_11 = arith.constant dense<0.000000e+00> : vector<1xf32>
      %20 = vector.multi_reduction <add>, %19, %cst_11 [1, 2] : vector<1x8x128xf32> to vector<1xf32>
      %21 = vector.shape_cast %20 : vector<1xf32> to vector<1x1x1xf32>
      %22 = vector.extract %21[0, 0, 0] : f32 from vector<1x1x1xf32>
      %c0_12 = arith.constant 0 : index
      %c0_13 = arith.constant 0 : index
      %23 = memref.load %arg4[%c0_12, %c0_13] : memref<1x1xf32, #tpu.memory_space<smem>>
      memref.store %22, %arg4[%c0_12, %c0_13] : memref<1x1xf32, #tpu.memory_space<smem>>
    } else {
    }
    return
  }
  func.func @transform_0(%arg0: i32, %arg1: i32) -> (i32, i32) {
    %c1_i32 = arith.constant 1 : i32
    %0 = arith.muli %arg0, %c1_i32 : i32
    %1 = arith.addi %0, %arg1 : i32
    %c0_i32 = arith.constant 0 : i32
    %c0_i32_0 = arith.constant 0 : i32
    return %1, %c0_i32 : i32, i32
  }
  func.func @transform_1(%arg0: i32, %arg1: i32) -> (i32, i32) {
    %c1_i32 = arith.constant 1 : i32
    %0 = arith.muli %arg0, %c1_i32 : i32
    %1 = arith.addi %0, %arg1 : i32
    %c0_i32 = arith.constant 0 : i32
    %c0_i32_0 = arith.constant 0 : i32
    return %1, %c0_i32 : i32, i32
  }
  func.func @transform_2(%arg0: i32, %arg1: i32) -> (i32, i32) {
    %c0_i32 = arith.constant 0 : i32
    %c0_i32_0 = arith.constant 0 : i32
    return %arg0, %c0_i32 : i32, i32
  }
}

</mosaic_0001>

<bundles_post_ra>
// kernel: tpu_custom_call.1
= control target key start
LH: loop header
LB: loop body
LE: loop exit
PB: predicated region body
PF: predicated region fallthrough
CT: control target
= control target key end

     0   :  { %7 = vsyncpa [#allocation4], 0  ;;  %s205_s0 = inlined_call_operand.hbm [shape: f32[16,128], index: 0, kind: input, shape index: {}]   ;;  %s206_s1 = inlined_call_operand.hbm [shape: f32[16,128], index: 1, kind: input, shape index: {}]   ;;  %s207_s2 = inlined_call_operand.hbm [shape: f32[1,1], index: 2, kind: output, shape index: {}]  }
   0x1   :  { %8 = vsyncpa [#allocation7], 0 }
   0x2   :  { %9 = vsyncpa [#allocation5], 0  ;;  %s18_s11 = sshll.u32 %s205_s0, 4  ;;  %s176_s12 = smov [#allocation3]   ;;  %s19_s11 = int_to_ptr.hbm [resolvable:$true] %s18_s11 }
   0x3   :  { %s20_s13 = sshll.u32 %s176_s12, 4  ;;  %s35_s16 = sshll.u32 %s206_s1, 4  ;;  %s21_s13 = int_to_ptr.vmem [resolvable:$true] %s20_s13  ;;  %s36_s16 = int_to_ptr.hbm [resolvable:$true] %s35_s16 }
   0x4   :  { %s177_s17 = smov 128   ;;  %s178_s18 = smov 8  }
   0x5   :  { %26 = dma.hbm_to_vmem [thread:$0]  %s19_s11, 256, %s21_s13, [#allocation4], %s177_s17, %s177_s17, %s178_s18  }
   0x6   :  { %s179_s19 = smov [#allocation6]  }
   0x7   :  { %s37_s20 = sshll.u32 %s179_s19, 4  ;;  %s38_s20 = int_to_ptr.vmem [resolvable:$true] %s37_s20 }
   0x8   :  { %43 = dma.hbm_to_vmem [thread:$0]  %s36_s16, 256, %s38_s20, [#allocation7], %s177_s17, %s177_s17, %s178_s18  }
   0x9   :  { %170 = dma.done.wait [#allocation4], 256  }
   0xa   :  { %171 = vsyncadd [#allocation4], 4294967040 }
   0xb   :  { %172 = dma.done.wait [#allocation7], 256  }
   0xc   :  { %173 = vsyncadd [#allocation7], 4294967040  ;;  %v61_v0 = vld [vmem:[#allocation6] sm:$0xff]  ;;  %v62_v1 = vld [vmem:[#allocation6 + $0x8] sm:$0xff]  ;;  %s91_s21 = sshll.u32 %s207_s2, 4  ;;  %s180_s23 = smov [#allocation8]   ;;  %s92_s21 = int_to_ptr.hbm [resolvable:$true] %s91_s21 }
   0xd   :  { %v63_v2 = vld [vmem:[#allocation3] sm:$0xff]  ;;  %v64_v3 = vld [vmem:[#allocation3 + $0x8] sm:$0xff] }
   0xe   :  { %v65_v4 = vsub.f32 %v61_v0, %v63_v2  ;;  %v66_v5 = vsub.f32 %v62_v1, %v64_v3 }
  0x10   :  { %v68_v6 = vadd.f32 %v66_v5, %v65_v4 }
  0x12   :  { %75 = vadd.xlane.f32.xlu0 %v68_v6 }
  0x85   :  { %v76_v7 = vpop.xlane.xlu0 %75 }
  0x86   :  { %v77_v8 = vrot.slane %v76_v7, 4 }
  0x88   :  { %v78_v9 = vadd.f32 %v77_v8, %v76_v7 }
  0x8a   :  { %v79_v10 = vrot.slane %v78_v9, 2 }
  0x8c   :  { %v80_v11 = vadd.f32 %v79_v10, %v78_v9 }
  0x8e   :  { %v81_v12 = vrot.slane %v80_v11, 1 }
  0x90   :  { %v82_v13 = vadd.f32 %v81_v12, %v80_v11 }
  0x92   :  { %103 = vpush %v82_v13 }
  0xc3   :  { %s104_s22 = spop %103 }
  0xc4   :  { %85 = sst [smem:[#allocation8]] %s104_s22 }
  0xc5   :  { %94 = dma.smem_to_hbm %s180_s23, 16, %s92_s21, [#allocation5]  }
  0xc6   :  { %174 = dma.done.wait [#allocation5], 16  }
  0xc7   :  { %175 = vsyncadd [#allocation5], 4294967280 }
  0xc8   :  { %99 = sfence }
  0xc9   :  { %100 = vsyncpa [#allocation4], 1 }
  0xca   :  { %101 = vsyncpa [#allocation7], 1 }
  0xcb   :  { %102 = vsyncpa [#allocation5], 1 }

</bundles_post_ra>
